<compile_context>
chip_gen: v7x
topology: tpu7x:2x2x1
jax: 0.10.0
libtpu: 0.0.40
codegen_flags: <defaults>
</compile_context>

<pallas_src>
import functools

import jax
import jax.numpy as jnp
from jax.experimental import pallas as pl
from jax.experimental.pallas import tpu as pltpu


# ----------------------------------------------------------------------------
# Pallas kernels
# ----------------------------------------------------------------------------
def _conv_bn_act_kernel_multi_k(p_ref, w_ref, s_ref, b_ref, o_ref, acc_ref, *,
                                activation: bool):
    # p_ref: (tm, tk)   bf16 im2col patch tile
    # w_ref: (tk, tn)   bf16 flattened conv-weight tile (transposed)
    # s_ref: (1, tn)    f32 folded BN scale  = gamma / sqrt(var + eps)
    # b_ref: (1, tn)    f32 folded BN bias   = beta - mean * scale
    # o_ref: (tm, tn)   f32 output tile
    # acc_ref: (tm, tn) f32 VMEM accumulator scratch
    k = pl.program_id(2)

    @pl.when(k == 0)
    def _():
        acc_ref[...] = jnp.zeros_like(acc_ref)

    acc_ref[...] += jnp.dot(p_ref[...], w_ref[...],
                            preferred_element_type=jnp.float32)

    @pl.when(k == pl.num_programs(2) - 1)
    def _():
        y = acc_ref[...] * s_ref[...] + b_ref[...]
        if activation:
            y = jnp.maximum(y, 0.0)
        o_ref[...] = y.astype(o_ref.dtype)


def _conv_bn_act_kernel_single_k(p_ref, w_ref, s_ref, b_ref, o_ref, *,
                                 activation: bool):
    # Whole reduction fits one tile: no accumulator scratch, no K grid axis.
    y = jnp.dot(p_ref[...], w_ref[...], preferred_element_type=jnp.float32)
    y = y * s_ref[...] + b_ref[...]
    if activation:
        y = jnp.maximum(y, 0.0)
    o_ref[...] = y.astype(o_ref.dtype)


# ----------------------------------------------------------------------------
# Helpers
# ----------------------------------------------------------------------------
def _round_up(x, m):
    return ((x + m - 1) // m) * m


def _pick_tile(dim_p, cap):
    """Largest multiple of 128 <= cap that divides dim_p (dim_p % 128 == 0)."""
    t = min(cap, dim_p)
    t = (t // 128) * 128
    while dim_p % t != 0:
        t -= 128
    return t


def _fused_matmul_bn_act(patches_b, w_flat, bn_scale, bn_bias, *, activation):
    """patches_b: (M, K) bf16, w_flat: (K, Cout) f32, bn_*: (Cout,) f32.

    Returns (M, Cout) f32 = act((patches @ w_flat) * scale + bias).
    """
    M, K = patches_b.shape
    Cout = w_flat.shape[1]

    # --- padded / tiled sizes -------------------------------------------------
    Kp = _round_up(K, 128)
    Cout_p = _round_up(Cout, 128)        # lane-dense output (no masked stores)
    tm = min(512, _round_up(M, 8))       # large M tile: amortize per-step cost
    Mp = _round_up(M, tm)
    tk = _pick_tile(Kp, 512)             # K reduction tile
    tn = _pick_tile(Cout_p, 512)         # Cout tile
    k_steps = Kp // tk

    # --- pad matmul inputs (bf16, single pad each) -----------------------------
    patches_p = jnp.pad(patches_b, ((0, Mp - M), (0, Kp - K)))
    w_b = jnp.pad(w_flat.astype(jnp.bfloat16),
                  ((0, Kp - K), (0, Cout_p - Cout)))
    scale_p = jnp.pad(bn_scale.astype(jnp.float32),
                      (0, Cout_p - Cout)).reshape(1, Cout_p)
    bias_p = jnp.pad(bn_bias.astype(jnp.float32),
                     (0, Cout_p - Cout)).reshape(1, Cout_p)

    # --- VMEM budget (double-buffered inputs/outputs + accumulator) ------------
    vmem_bytes = (2 * tm * tk * 2          # patches tile, bf16, x2 buffers
                  + 2 * tk * tn * 2        # weight tile,  bf16, x2 buffers
                  + 2 * tm * tn * 4        # output tile,  f32,  x2 buffers
                  + tm * tn * 4            # accumulator scratch (multi-K)
                  + 4 * tn * 4)            # scale/bias tiles
    vmem_limit = int(min(max(2 * vmem_bytes, 32 << 20), 48 << 20))

    if k_steps == 1:
        kernel = functools.partial(_conv_bn_act_kernel_single_k,
                                   activation=activation)
        out = pl.pallas_call(
            kernel,
            out_shape=jax.ShapeDtypeStruct((Mp, Cout_p), jnp.float32),
            grid_spec=pltpu.PrefetchScalarGridSpec(
                num_scalar_prefetch=0,
                grid=(Mp // tm, Cout_p // tn),
                in_specs=[
                    pl.BlockSpec((tm, tk), lambda i, j: (i, 0)),
                    pl.BlockSpec((tk, tn), lambda i, j: (0, j)),
                    pl.BlockSpec((1, tn), lambda i, j: (0, j)),
                    pl.BlockSpec((1, tn), lambda i, j: (0, j)),
                ],
                out_specs=pl.BlockSpec((tm, tn), lambda i, j: (i, j)),
            ),
            compiler_params=pltpu.CompilerParams(
                dimension_semantics=("parallel", "parallel"),
                vmem_limit_bytes=vmem_limit,
            ),
        )(patches_p, w_b, scale_p, bias_p)
    else:
        kernel = functools.partial(_conv_bn_act_kernel_multi_k,
                                   activation=activation)
        out = pl.pallas_call(
            kernel,
            out_shape=jax.ShapeDtypeStruct((Mp, Cout_p), jnp.float32),
            grid_spec=pltpu.PrefetchScalarGridSpec(
                num_scalar_prefetch=0,
                grid=(Mp // tm, Cout_p // tn, k_steps),
                in_specs=[
                    pl.BlockSpec((tm, tk), lambda i, j, k: (i, k)),
                    pl.BlockSpec((tk, tn), lambda i, j, k: (k, j)),
                    pl.BlockSpec((1, tn), lambda i, j, k: (0, j)),
                    pl.BlockSpec((1, tn), lambda i, j, k: (0, j)),
                ],
                out_specs=pl.BlockSpec((tm, tn), lambda i, j, k: (i, j)),
                scratch_shapes=[pltpu.VMEM((tm, tn), jnp.float32)],
            ),
            compiler_params=pltpu.CompilerParams(
                dimension_semantics=("parallel", "parallel", "arbitrary"),
                vmem_limit_bytes=vmem_limit,
            ),
        )(patches_p, w_b, scale_p, bias_p)

    return out[:M, :Cout]


# ----------------------------------------------------------------------------
# im2col glue (plain JAX, built directly in bf16)
# ----------------------------------------------------------------------------
# TODO(synk): fuse the kxk patch gather into the BlockSpec/index_map over an
# NHWC input instead of materializing the im2col buffer in HBM.
def _im2col_bf16(x, kernel_size, stride, padding):
    """x: (N, C, H, W) -> patches (N*Ho*Wo, C*k*k) in bf16, plus (Ho, Wo)."""
    n, c, h, w = x.shape
    k = kernel_size
    ho = (h + 2 * padding - k) // stride + 1
    wo = (w + 2 * padding - k) // stride + 1

    xb = x.astype(jnp.bfloat16)

    if k == 1 and padding == 0:
        # Fast path (most ResNet50 convs): just a strided slice + transpose.
        xs = xb[:, :, ::stride, ::stride] if stride > 1 else xb
        patches = jnp.transpose(xs, (0, 2, 3, 1)).reshape(n * ho * wo, c)
        return patches, ho, wo

    xp = jnp.pad(xb, ((0, 0), (0, 0), (padding, padding), (padding, padding)))
    cols = []
    for i in range(k):
        for j in range(k):
            sl = xp[:, :, i: i + (ho - 1) * stride + 1: stride,
                          j: j + (wo - 1) * stride + 1: stride]
            cols.append(sl)  # (N, C, Ho, Wo)
    # (k*k, N, C, Ho, Wo) -> (N, Ho, Wo, C, k*k) -> (N*Ho*Wo, C*k*k)
    patches = jnp.stack(cols, axis=0)
    patches = jnp.transpose(patches, (1, 3, 4, 2, 0))
    patches = patches.reshape(n * ho * wo, c * k * k)
    return patches, ho, wo


# ----------------------------------------------------------------------------
# Conv module equivalent (eval-mode BN folded into the matmul epilogue)
# ----------------------------------------------------------------------------
class Conv:
    def __init__(self, in_channels, out_channels, kernel_size=1, stride=1,
                 padding=None, groups=1, activation=True, key=None):
        assert groups == 1, "groups > 1 not needed for this synthetic instance"
        self.in_channels = in_channels
        self.out_channels = out_channels
        self.kernel_size = kernel_size
        self.stride = stride
        self.padding = kernel_size // 2 if padding is None else padding
        self.activation = activation

        key = jax.random.PRNGKey(42) if key is None else key
        kw, kg, kb, km, kv = jax.random.split(key, 5)
        # Conv2d weight (no bias): (C_out, C_in, k, k)
        fan_in = in_channels * kernel_size * kernel_size
        self.weight = jax.random.normal(
            kw, (out_channels, in_channels, kernel_size, kernel_size),
            dtype=jnp.float32) * (1.0 / fan_in) ** 0.5
        # BatchNorm2d params & running stats (eval-mode BN)
        self.gamma = 1.0 + 0.1 * jax.random.normal(kg, (out_channels,), jnp.float32)
        self.beta = 0.1 * jax.random.normal(kb, (out_channels,), jnp.float32)
        self.running_mean = 0.1 * jax.random.normal(km, (out_channels,), jnp.float32)
        self.running_var = jnp.abs(
            1.0 + 0.1 * jax.random.normal(kv, (out_channels,), jnp.float32))
        self.eps = 1e-5

    def __call__(self, x):
        # x: (N, C_in, H, W)
        n = x.shape[0]
        patches, ho, wo = _im2col_bf16(x, self.kernel_size, self.stride,
                                       self.padding)
        w_flat = self.weight.reshape(self.out_channels, -1).T  # (C_in*k*k, C_out)

        scale = self.gamma / jnp.sqrt(self.running_var + self.eps)
        bias = self.beta - self.running_mean * scale

        out = _fused_matmul_bn_act(patches, w_flat, scale, bias,
                                   activation=self.activation)
        # (N*Ho*Wo, C_out) -> (N, C_out, Ho, Wo)
        out = out.reshape(n, ho, wo, self.out_channels)
        out = jnp.transpose(out, (0, 3, 1, 2))
        return out


# ----------------------------------------------------------------------------
# Pure-JAX reference for correctness check
# ----------------------------------------------------------------------------
def _reference(module: Conv, x):
    y = jax.lax.conv_general_dilated(
        x.astype(jnp.float32), module.weight,
        window_strides=(module.stride, module.stride),
        padding=[(module.padding, module.padding)] * 2,
        dimension_numbers=("NCHW", "OIHW", "NCHW"))
    scale = module.gamma / jnp.sqrt(module.running_var + module.eps)
    bias = module.beta - module.running_mean * scale
    y = y * scale[None, :, None, None] + bias[None, :, None, None]
    if module.activation:
        y = jnp.maximum(y, 0.0)
    return y


if __name__ == "__main__":
    key = jax.random.PRNGKey(0)
    kx, kp = jax.random.split(key)

    # Small shapes: batch=2, in_channels=4, out_channels=8, spatial=16x16, k=3
    x = jax.random.normal(kx, (2, 4, 16, 16), dtype=jnp.float32)
    conv = Conv(in_channels=4, out_channels=8, kernel_size=3, stride=1,
                activation=True, key=kp)

    out = conv(x)
    out = jax.block_until_ready(out)

    ref = _reference(conv, x)
    assert out.shape == ref.shape == (2, 8, 16, 16), out.shape
    # bf16 matmul inputs (f32 accumulation) -> looser tolerance than pure f32.
    assert jnp.allclose(out, ref, rtol=2e-2, atol=2e-2), \
        float(jnp.max(jnp.abs(out - ref)))

    print("KERNEL_OK")
</pallas_src>

<mosaic_0001>
module attributes {stable_mosaic.version = 11 : i64} {
  func.func @_conv_bn_act_kernel_single_k(%arg0: i32, %arg1: i32, %arg2: memref<512x128xbf16, #tpu.memory_space<vmem>>, %arg3: memref<128x128xbf16, #tpu.memory_space<vmem>>, %arg4: memref<1x128xf32, #tpu.memory_space<vmem>>, %arg5: memref<1x128xf32, #tpu.memory_space<vmem>>, %arg6: memref<512x128xf32, #tpu.memory_space<vmem>>) attributes {dimension_semantics = [#tpu.dimension_semantics<parallel>, #tpu.dimension_semantics<parallel>], iteration_bounds = array<i64: 1, 1>, scalar_prefetch = 0 : i64, scratch_operands = 0 : i64, tpu.core_type = #tpu.core_type<tc>, window_params = [{transform_indices = @transform_0, window_bounds = array<i64: 512, 128>}, {transform_indices = @transform_1, window_bounds = array<i64: 128, 128>}, {transform_indices = @transform_2, window_bounds = array<i64: 1, 128>}, {transform_indices = @transform_3, window_bounds = array<i64: 1, 128>}, {transform_indices = @transform_4, window_bounds = array<i64: 512, 128>}]} {
    %c0 = arith.constant 0 : index
    %c0_0 = arith.constant 0 : index
    %0 = vector.load %arg2[%c0, %c0_0] : memref<512x128xbf16, #tpu.memory_space<vmem>>, vector<512x128xbf16>
    %c0_1 = arith.constant 0 : index
    %c0_2 = arith.constant 0 : index
    %1 = vector.load %arg3[%c0_1, %c0_2] : memref<128x128xbf16, #tpu.memory_space<vmem>>, vector<128x128xbf16>
    %cst = arith.constant dense<0.000000e+00> : vector<512x128xf32>
    %2 = tpu.matmul %0, %1, %cst {dimension_numbers = #tpu.dot_dimension_numbers<[1], [0], [0], [1], [0, 0, 1, 1], [], []>} : vector<512x128xbf16>, vector<128x128xbf16>, vector<512x128xf32> -> vector<512x128xf32>
    %c0_3 = arith.constant 0 : index
    %c0_4 = arith.constant 0 : index
    %3 = vector.load %arg4[%c0_3, %c0_4] : memref<1x128xf32, #tpu.memory_space<vmem>>, vector<1x128xf32>
    %4 = vector.broadcast %3 : vector<1x128xf32> to vector<512x128xf32>
    %5 = arith.mulf %2, %4 : vector<512x128xf32>
    %c0_5 = arith.constant 0 : index
    %c0_6 = arith.constant 0 : index
    %6 = vector.load %arg5[%c0_5, %c0_6] : memref<1x128xf32, #tpu.memory_space<vmem>>, vector<1x128xf32>
    %7 = vector.broadcast %6 : vector<1x128xf32> to vector<512x128xf32>
    %8 = arith.addf %5, %7 : vector<512x128xf32>
    %cst_7 = arith.constant 0.000000e+00 : f32
    %9 = vector.broadcast %cst_7 : f32 to vector<512x128xf32>
    %10 = arith.maximumf %8, %9 : vector<512x128xf32>
    %c0_8 = arith.constant 0 : index
    %c0_9 = arith.constant 0 : index
    %11 = vector.load %arg6[%c0_8, %c0_9] : memref<512x128xf32, #tpu.memory_space<vmem>>, vector<512x128xf32>
    tpu.vector_store %arg6[%c0_8, %c0_9], %10 {strides = array<i32>} : memref<512x128xf32, #tpu.memory_space<vmem>>, vector<512x128xf32>,
    return
  }
  func.func @transform_0(%arg0: i32, %arg1: i32) -> (i32, i32) {
    %c0_i32 = arith.constant 0 : i32
    %c0_i32_0 = arith.constant 0 : i32
    return %arg0, %c0_i32 : i32, i32
  }
  func.func @transform_1(%arg0: i32, %arg1: i32) -> (i32, i32) {
    %c0_i32 = arith.constant 0 : i32
    %c0_i32_0 = arith.constant 0 : i32
    return %c0_i32, %arg1 : i32, i32
  }
  func.func @transform_2(%arg0: i32, %arg1: i32) -> (i32, i32) {
    %c0_i32 = arith.constant 0 : i32
    %c0_i32_0 = arith.constant 0 : i32
    return %c0_i32, %arg1 : i32, i32
  }
  func.func @transform_3(%arg0: i32, %arg1: i32) -> (i32, i32) {
    %c0_i32 = arith.constant 0 : i32
    %c0_i32_0 = arith.constant 0 : i32
    return %c0_i32, %arg1 : i32, i32
  }
  func.func @transform_4(%arg0: i32, %arg1: i32) -> (i32, i32) {
    %c0_i32 = arith.constant 0 : i32
    return %arg0, %arg1 : i32, i32
  }
}

</mosaic_0001>

<bundles_post_ra>
// kernel: tpu_custom_call.1
= control target key start
LH: loop header
LB: loop body
LE: loop exit
PB: predicated region body
PF: predicated region fallthrough
CT: control target
= control target key end

     0   :  { %9 = vsyncpa [#allocation3], 0  ;;  %s1447_s0 = inlined_call_operand.hbm [shape: bf16[512,128], index: 0, kind: input, shape index: {}]   ;;  %s1448_s1 = inlined_call_operand.hbm [shape: bf16[128,128], index: 1, kind: input, shape index: {}]   ;;  %s1449_s2 = inlined_call_operand.vmem [shape: f32[1,128], index: 2, kind: input, shape index: {}]   ;;  %s1450_s3 = inlined_call_operand.vmem [shape: f32[1,128], index: 3, kind: input, shape index: {}]   ;;  %s1451_s4 = inlined_call_operand.hbm [shape: f32[512,128], index: 4, kind: output, shape index: {}]  }
   0x1   :  { %10 = vsyncpa [#allocation6], 0 }
   0x2   :  { %11 = vsyncpa [#allocation4], 0  ;;  %s1241_s15 = smov [#allocation2]   ;;  %s1169_s19 = scalar_lea.hbm %s1447_s0, 4096 }
   0x3   :  { %s17_s16 = sshll.u32 %s1241_s15, 4  ;;  %p1170_p0 = scmp.ne.s32.totalorder %s1447_s0, %s1169_s19  ;;  %s18_s16 = int_to_ptr.vmem [resolvable:$true] %s17_s16 }
   0x4   :  { %p1173_p1 = scmp.lt.u32.totalorder %s1169_s19, %s1447_s0 }
   0x6   :  { %p1175_p2 = pnand %p1173_p1, %p1170_p0 }
   0x8   :  { %1178 = shalt.err (!%p1175_p2)
}
   0x9   :  { %s1179_s24 = scalar_lea.vmem %s18_s16, 4096  ;;  %p1184_p4 = scmp.lt.s32.totalorder %s18_s16, %s18_s16 }
   0xa   :  { %p1180_p3 = scmp.ne.s32.totalorder %s18_s16, %s1179_s24  ;;  %p1185_p5 = scmp.lt.s32.totalorder %s1179_s24, %s1179_s24 }
   0xc   :  { %p1186_p6 = por %p1185_p5, %p1184_p4 }
   0xe   :  { %p1187_p7 = pnand %p1186_p6, %p1180_p3 }
  0x10   :  { %1190 = shalt.err (!%p1187_p7)
}
  0x11   :  { %s1242_s25 = smov 64   ;;  %s1243_s26 = smov 4  }
  0x12   :  { %23 = dma.hbm_to_vmem [thread:$0]  %s1447_s0, 4096, %s18_s16, [#allocation3], %s1242_s25, %s1242_s25, %s1243_s26  }
  0x13   :  { %s1244_s29 = smov [#allocation5]   ;;  %s1191_s7 = scalar_lea.hbm %s1448_s1, 1024 }
  0x14   :  { %s29_s30 = sshll.u32 %s1244_s29, 4  ;;  %p1192_p8 = scmp.ne.s32.totalorder %s1448_s1, %s1191_s7  ;;  %s30_s30 = int_to_ptr.vmem [resolvable:$true] %s29_s30 }
  0x15   :  { %p1195_p9 = scmp.lt.u32.totalorder %s1191_s7, %s1448_s1 }
  0x17   :  { %p1197_p10 = pnand %p1195_p9, %p1192_p8 }
  0x19   :  { %1200 = shalt.err (!%p1197_p10)
}
  0x1a   :  { %s1201_s12 = scalar_lea.vmem %s30_s30, 1024  ;;  %p1206_p12 = scmp.lt.s32.totalorder %s30_s30, %s30_s30 }
  0x1b   :  { %p1202_p11 = scmp.ne.s32.totalorder %s30_s30, %s1201_s12  ;;  %p1207_p13 = scmp.lt.s32.totalorder %s1201_s12, %s1201_s12 }
  0x1d   :  { %p1208_p0 = por %p1207_p13, %p1206_p12 }
  0x1f   :  { %p1209_p1 = pnand %p1208_p0, %p1202_p11 }
  0x21   :  { %1212 = shalt.err (!%p1209_p1)
}
  0x22   :  { %35 = dma.hbm_to_vmem [thread:$0]  %s1448_s1, 1024, %s30_s30, [#allocation6], %s1242_s25, %s1242_s25, %s1243_s26  }
  0x23   :  { %1235 = dma.done.wait [#allocation3], 4096  }
  0x24   :  { %1236 = vsyncadd [#allocation3], 4294963200 }
  0x25   :  { %1237 = dma.done.wait [#allocation6], 1024  }
  0x26   :  { %1238 = vsyncadd [#allocation6], 4294966272  ;;  %v1129_v0 = vld [vmem:[#allocation5] sm:$0xff]   ;;  %v1130_v1 = vld [vmem:[#allocation5 + $0x8] sm:$0xff]  }
  0x27   :  { %1026 = vmatprep.subr.bf16.mxu0 %v1129_v0  ;;  %1106 = vmatprep.subr.bf16.mxu1 %v1129_v0  ;;  %v1131_v2 = vld [vmem:[#allocation5 + $0x10] sm:$0xff]   ;;  %v1132_v3 = vld [vmem:[#allocation5 + $0x18] sm:$0xff]   ;;  %v1137_v4 = vld [vmem:[#allocation2] sm:$0xff]  }
  0x28   :  { %1027 = vmatpush3.bf16.msra.mxu0 %v1129_v0  ;;  %1114 = vmatpush3.bf16.msra.mxu1 %v1129_v0  ;;  %v1138_v5 = vld [vmem:[#allocation2 + $0x80] sm:$0xff]   ;;  %v1134_v7 = vld [vmem:[#allocation5 + $0x28] sm:$0xff]   ;;  %v1135_v8 = vld [vmem:[#allocation5 + $0x30] sm:$0xff]  }
  0x29   :  { %1028 = vmatprep.subr.bf16.mxu0 %v1130_v1  ;;  %1107 = vmatprep.subr.bf16.mxu1 %v1130_v1  ;;  %v1133_v6 = vld [vmem:[#allocation5 + $0x20] sm:$0xff]   ;;  %v1136_v9 = vld [vmem:[#allocation5 + $0x38] sm:$0xff]   ;;  %v1139_v10 = vld [vmem:[#allocation2 + $0x8] sm:$0xff]  }
  0x2a   :  { %1042 = vmatprep.mubr.bf16.mxu0 %v1137_v4  ;;  %1074 = vmatprep.mubr.bf16.mxu1 %v1138_v5  ;;  %v1140_v11 = vld [vmem:[#allocation2 + $0x88] sm:$0xff]   ;;  %v1141_v12 = vld [vmem:[#allocation2 + $0x10] sm:$0xff]   ;;  %v1143_v14 = vld [vmem:[#allocation2 + $0x18] sm:$0xff]  }
  0x2b   :  { %v1142_v13 = vld [vmem:[#allocation2 + $0x90] sm:$0xff]   ;;  %v1144_v15 = vld [vmem:[#allocation2 + $0x98] sm:$0xff]   ;;  %v1145_v16 = vld [vmem:[#allocation2 + $0x20] sm:$0xff]  }
  0x2c   :  { %1029 = vmatpush3.bf16.msra.mxu0 %v1130_v1  ;;  %1115 = vmatpush3.bf16.msra.mxu1 %v1130_v1  ;;  %v1146_v17 = vld [vmem:[#allocation2 + $0xa0] sm:$0xff]   ;;  %v1147_v18 = vld [vmem:[#allocation2 + $0x28] sm:$0xff]   ;;  %v1149_v20 = vld [vmem:[#allocation2 + $0x30] sm:$0xff]  }
  0x2d   :  { %1030 = vmatprep.subr.bf16.mxu0 %v1131_v2  ;;  %1108 = vmatprep.subr.bf16.mxu1 %v1131_v2  ;;  %v1148_v19 = vld [vmem:[#allocation2 + $0xa8] sm:$0xff]   ;;  %v1150_v21 = vld [vmem:[#allocation2 + $0xb0] sm:$0xff]   ;;  %v1151_v22 = vld [vmem:[#allocation2 + $0x38] sm:$0xff]  }
  0x2e   :  { %v1152_v23 = vld [vmem:[#allocation2 + $0xb8] sm:$0xff]   ;;  %v1153_v24 = vld [vmem:[#allocation2 + $0x40] sm:$0xff]   ;;  %v1155_v26 = vld [vmem:[#allocation2 + $0x48] sm:$0xff]  }
  0x2f   :  { %v1154_v25 = vld [vmem:[#allocation2 + $0xc0] sm:$0xff]   ;;  %v1156_v27 = vld [vmem:[#allocation2 + $0xc8] sm:$0xff]   ;;  %v1157_v28 = vld [vmem:[#allocation2 + $0x50] sm:$0xff]  }
  0x30   :  { %1031 = vmatpush3.bf16.msra.mxu0 %v1131_v2  ;;  %1116 = vmatpush3.bf16.msra.mxu1 %v1131_v2  ;;  %v1158_v29 = vld [vmem:[#allocation2 + $0xd0] sm:$0xff]   ;;  %v1159_v30 = vld [vmem:[#allocation2 + $0x58] sm:$0xff]   ;;  %v1161_v32 = vld [vmem:[#allocation2 + $0x60] sm:$0xff]  }
  0x31   :  { %1032 = vmatprep.subr.bf16.mxu0 %v1132_v3  ;;  %1109 = vmatprep.subr.bf16.mxu1 %v1132_v3  ;;  %v1160_v31 = vld [vmem:[#allocation2 + $0xd8] sm:$0xff]   ;;  %v1162_v33 = vld [vmem:[#allocation2 + $0xe0] sm:$0xff]   ;;  %v1163_v34 = vld [vmem:[#allocation2 + $0x68] sm:$0xff]  }
  0x32   :  { %v1164_v35 = vld [vmem:[#allocation2 + $0xe8] sm:$0xff]   ;;  %v1165_v36 = vld [vmem:[#allocation2 + $0x70] sm:$0xff]   ;;  %v1167_v38 = vld [vmem:[#allocation2 + $0x78] sm:$0xff]  }
  0x33   :  { %v1166_v37 = vld [vmem:[#allocation2 + $0xf0] sm:$0xff]   ;;  %v1168_v39 = vld [vmem:[#allocation2 + $0xf8] sm:$0xff]   ;;  %v1300_v40 = vld [vmem:[%s1449_s2] ss:$0 sm:$0xff]  ;;  %s1245_s2 = smov [#allocation7]  }
  0x34   :  { %1033 = vmatpush3.bf16.msra.mxu0 %v1132_v3  ;;  %1117 = vmatpush3.bf16.msra.mxu1 %v1132_v3  ;;  %v1305_v42 = vld [vmem:[%s1450_s3] ss:$0 sm:$0xff]  ;;  %s931_s3 = sshll.u32 %s1245_s2, 4  ;;  %s932_s3 = int_to_ptr.vmem [resolvable:$true] %s931_s3 }
  0x35   :  { %1034 = vmatprep.subr.bf16.mxu0 %v1133_v6  ;;  %1110 = vmatprep.subr.bf16.mxu1 %v1133_v6  ;;  %s1213_s17 = scalar_lea.vmem %s932_s3, 8192  ;;  %p1218_p3 = scmp.lt.s32.totalorder %s932_s3, %s932_s3 }
  0x36   :  { %p1214_p2 = scmp.ne.s32.totalorder %s932_s3, %s1213_s17  ;;  %p1219_p4 = scmp.lt.s32.totalorder %s1213_s17, %s1213_s17 }
  0x38   :  { %1035 = vmatpush3.bf16.msra.mxu0 %v1133_v6  ;;  %1118 = vmatpush3.bf16.msra.mxu1 %v1133_v6  ;;  %p1220_p5 = por %p1219_p4, %p1218_p3 }
  0x39   :  { %1036 = vmatprep.subr.bf16.mxu0 %v1134_v7  ;;  %1111 = vmatprep.subr.bf16.mxu1 %v1134_v7 }
  0x3a   :  { %p1221_p6 = pnand %p1220_p5, %p1214_p2 }
  0x3c   :  { %1037 = vmatpush3.bf16.msra.mxu0 %v1134_v7  ;;  %1119 = vmatpush3.bf16.msra.mxu1 %v1134_v7 }
  0x3d   :  { %1038 = vmatprep.subr.bf16.mxu0 %v1135_v8  ;;  %1112 = vmatprep.subr.bf16.mxu1 %v1135_v8 }
  0x40   :  { %1039 = vmatpush3.bf16.msra.mxu0 %v1135_v8  ;;  %1120 = vmatpush3.bf16.msra.mxu1 %v1135_v8 }
  0x41   :  { %1040 = vmatprep.subr.bf16.mxu0 %v1136_v9  ;;  %1113 = vmatprep.subr.bf16.mxu1 %v1136_v9 }
  0x44   :  { %1041 = vmatpush3.bf16.msra.mxu0 %v1136_v9  ;;  %1121 = vmatpush3.bf16.msra.mxu1 %v1136_v9 }
  0x47   :  { %1043 = vmatmul.mubr.bf16.vlgmr.msra.gmra.mrb[0].mxu0 %v1139_v10  ;;  %1075 = vmatmul.mubr.bf16.vlgmr.msra.gmra.mrb[0].mxu1 %v1140_v11 }
  0x48   :  { %1046 = vmatprep.mubr.bf16.mxu0 %v1141_v12  ;;  %1078 = vmatprep.mubr.bf16.mxu1 %v1142_v13 }
  0x4f   :  { %1047 = vmatmul.mubr.bf16.gmra.mrb[4].mxu0 %v1143_v14  ;;  %1079 = vmatmul.mubr.bf16.gmra.mrb[4].mxu1 %v1144_v15 }
  0x50   :  { %1050 = vmatprep.mubr.bf16.mxu0 %v1145_v16  ;;  %1082 = vmatprep.mubr.bf16.mxu1 %v1146_v17 }
  0x57   :  { %1051 = vmatmul.mubr.bf16.gmra.mrb[8].mxu0 %v1147_v18  ;;  %1083 = vmatmul.mubr.bf16.gmra.mrb[8].mxu1 %v1148_v19 }
  0x58   :  { %1054 = vmatprep.mubr.bf16.mxu0 %v1149_v20  ;;  %1086 = vmatprep.mubr.bf16.mxu1 %v1150_v21 }
  0x5f   :  { %1055 = vmatmul.mubr.bf16.gmra.mrb[12].mxu0 %v1151_v22  ;;  %1087 = vmatmul.mubr.bf16.gmra.mrb[12].mxu1 %v1152_v23 }
  0x60   :  { %1058 = vmatprep.mubr.bf16.mxu0 %v1153_v24  ;;  %1090 = vmatprep.mubr.bf16.mxu1 %v1154_v25 }
  0x67   :  { %1059 = vmatmul.mubr.bf16.gmra.mrb[16].mxu0 %v1155_v26  ;;  %1091 = vmatmul.mubr.bf16.gmra.mrb[16].mxu1 %v1156_v27 }
  0x68   :  { %1062 = vmatprep.mubr.bf16.mxu0 %v1157_v28  ;;  %1094 = vmatprep.mubr.bf16.mxu1 %v1158_v29 }
  0x6f   :  { %1063 = vmatmul.mubr.bf16.gmra.mrb[20].mxu0 %v1159_v30  ;;  %1095 = vmatmul.mubr.bf16.gmra.mrb[20].mxu1 %v1160_v31 }
  0x70   :  { %1066 = vmatprep.mubr.bf16.mxu0 %v1161_v32  ;;  %1098 = vmatprep.mubr.bf16.mxu1 %v1162_v33 }
  0x77   :  { %1067 = vmatmul.mubr.bf16.gmra.mrb[24].mxu0 %v1163_v34  ;;  %1099 = vmatmul.mubr.bf16.gmra.mrb[24].mxu1 %v1164_v35 }
  0x78   :  { %1070 = vmatprep.mubr.bf16.mxu0 %v1165_v36  ;;  %1102 = vmatprep.mubr.bf16.mxu1 %v1166_v37 }
  0x7f   :  { %1071 = vmatmul.mubr.bf16.gmra.mrb[28].mxu0 %v1167_v38  ;;  %1103 = vmatmul.mubr.bf16.gmra.mrb[28].mxu1 %v1168_v39 }
 0x11a   :  { %v1044_v41 = vpop.f32.mrb[0].mxu0  ;;  %v1076_v43 = vpop.f32.mrb[0].mxu1 }
 0x11b   :  { %v665_v44 = vmul.f32 %v1044_v41, %v1300_v40  ;;  %v697_v45 = vmul.f32 %v1076_v43, %v1300_v40  ;;  %v401_v46 = vpop.f32.mrb[1].mxu0  ;;  %v529_v47 = vpop.f32.mrb[1].mxu1 }
 0x11c   :  { %v663_v48 = vmul.f32 %v1300_v40, %v401_v46  ;;  %v695_v49 = vmul.f32 %v1300_v40, %v529_v47  ;;  %v1045_v50 = vpop.f32.mrb[2].mxu0  ;;  %v1077_v51 = vpop.f32.mrb[2].mxu1 }
 0x11d   :  { %v736_v52 = vadd.f32 %v1305_v42, %v665_v44  ;;  %v768_v53 = vadd.f32 %v1305_v42, %v697_v45  ;;  %v666_v54 = vmul.f32 %v1045_v50, %v1300_v40  ;;  %v698_v55 = vmul.f32 %v1077_v51, %v1300_v40  ;;  %v404_v56 = vpop.f32.mrb[3].mxu0  ;;  %v532_v57 = vpop.f32.mrb[3].mxu1 }
 0x11e   :  { %v734_v58 = vadd.f32 %v1305_v42, %v663_v48  ;;  %v766_v59 = vadd.f32 %v1305_v42, %v695_v49  ;;  %v664_v60 = vmul.f32 %v1300_v40, %v404_v56  ;;  %v696_v61 = vmul.f32 %v1300_v40, %v532_v57 }
 0x11f   :  { %v800_v62 = vmax.f32 %v736_v52, 0.0  ;;  %v832_v63 = vmax.f32 %v768_v53, 0.0  ;;  %v737_v0 = vadd.f32 %v1305_v42, %v666_v54  ;;  %v769_v1 = vadd.f32 %v1305_v42, %v698_v55 }
 0x120   :  { %v798_v2 = vmax.f32 %v734_v58, 0.0  ;;  %v830_v3 = vmax.f32 %v766_v59, 0.0  ;;  %v735_v4 = vadd.f32 %v1305_v42, %v664_v60  ;;  %v767_v5 = vadd.f32 %v1305_v42, %v696_v61 }
 0x121   :  { %864 = vst [vmem:[#allocation7 + $0x10] sm:$0xff] %v800_v62  ;;  %896 = vst [vmem:[#allocation7 + $0x110] sm:$0xff] %v832_v63  ;;  %v801_v6 = vmax.f32 %v737_v0, 0.0  ;;  %v833_v7 = vmax.f32 %v769_v1, 0.0 }
 0x122   :  { %862 = vst [vmem:[#allocation7] sm:$0xff] %v798_v2  ;;  %894 = vst [vmem:[#allocation7 + $0x100] sm:$0xff] %v830_v3  ;;  %v799_v8 = vmax.f32 %v735_v4, 0.0  ;;  %v831_v9 = vmax.f32 %v767_v5, 0.0  ;;  %v1048_v10 = vpop.f32.mrb[4].mxu0  ;;  %v1080_v11 = vpop.f32.mrb[4].mxu1 }
 0x123   :  { %865 = vst [vmem:[#allocation7 + $0x18] sm:$0xff] %v801_v6  ;;  %897 = vst [vmem:[#allocation7 + $0x118] sm:$0xff] %v833_v7  ;;  %v669_v12 = vmul.f32 %v1048_v10, %v1300_v40  ;;  %v701_v13 = vmul.f32 %v1080_v11, %v1300_v40  ;;  %v417_v14 = vpop.f32.mrb[5].mxu0  ;;  %v545_v15 = vpop.f32.mrb[5].mxu1 }
 0x124   :  { %863 = vst [vmem:[#allocation7 + $0x8] sm:$0xff] %v799_v8  ;;  %895 = vst [vmem:[#allocation7 + $0x108] sm:$0xff] %v831_v9  ;;  %v667_v16 = vmul.f32 %v1300_v40, %v417_v14  ;;  %v699_v17 = vmul.f32 %v1300_v40, %v545_v15  ;;  %v1049_v18 = vpop.f32.mrb[6].mxu0  ;;  %v1081_v19 = vpop.f32.mrb[6].mxu1 }
 0x125   :  { %v740_v20 = vadd.f32 %v1305_v42, %v669_v12  ;;  %v772_v21 = vadd.f32 %v1305_v42, %v701_v13  ;;  %v670_v22 = vmul.f32 %v1049_v18, %v1300_v40  ;;  %v702_v23 = vmul.f32 %v1081_v19, %v1300_v40  ;;  %v420_v24 = vpop.f32.mrb[7].mxu0  ;;  %v548_v25 = vpop.f32.mrb[7].mxu1 }
 0x126   :  { %v738_v26 = vadd.f32 %v1305_v42, %v667_v16  ;;  %v770_v27 = vadd.f32 %v1305_v42, %v699_v17  ;;  %v668_v28 = vmul.f32 %v1300_v40, %v420_v24  ;;  %v700_v29 = vmul.f32 %v1300_v40, %v548_v25 }
 0x127   :  { %v804_v30 = vmax.f32 %v740_v20, 0.0  ;;  %v836_v31 = vmax.f32 %v772_v21, 0.0  ;;  %v741_v32 = vadd.f32 %v1305_v42, %v670_v22  ;;  %v773_v33 = vadd.f32 %v1305_v42, %v702_v23 }
 0x128   :  { %v802_v34 = vmax.f32 %v738_v26, 0.0  ;;  %v834_v35 = vmax.f32 %v770_v27, 0.0  ;;  %v739_v36 = vadd.f32 %v1305_v42, %v668_v28  ;;  %v771_v37 = vadd.f32 %v1305_v42, %v700_v29 }
 0x129   :  { %868 = vst [vmem:[#allocation7 + $0x30] sm:$0xff] %v804_v30  ;;  %900 = vst [vmem:[#allocation7 + $0x130] sm:$0xff] %v836_v31  ;;  %v805_v38 = vmax.f32 %v741_v32, 0.0  ;;  %v837_v39 = vmax.f32 %v773_v33, 0.0 }
 0x12a   :  { %866 = vst [vmem:[#allocation7 + $0x20] sm:$0xff] %v802_v34  ;;  %898 = vst [vmem:[#allocation7 + $0x120] sm:$0xff] %v834_v35  ;;  %v803_v41 = vmax.f32 %v739_v36, 0.0  ;;  %v835_v43 = vmax.f32 %v771_v37, 0.0  ;;  %v1052_v44 = vpop.f32.mrb[8].mxu0  ;;  %v1084_v45 = vpop.f32.mrb[8].mxu1 }
 0x12b   :  { %869 = vst [vmem:[#allocation7 + $0x38] sm:$0xff] %v805_v38  ;;  %901 = vst [vmem:[#allocation7 + $0x138] sm:$0xff] %v837_v39  ;;  %v673_v46 = vmul.f32 %v1052_v44, %v1300_v40  ;;  %v705_v47 = vmul.f32 %v1084_v45, %v1300_v40  ;;  %v433_v48 = vpop.f32.mrb[9].mxu0  ;;  %v561_v49 = vpop.f32.mrb[9].mxu1 }
 0x12c   :  { %867 = vst [vmem:[#allocation7 + $0x28] sm:$0xff] %v803_v41  ;;  %899 = vst [vmem:[#allocation7 + $0x128] sm:$0xff] %v835_v43  ;;  %v671_v50 = vmul.f32 %v1300_v40, %v433_v48  ;;  %v703_v51 = vmul.f32 %v1300_v40, %v561_v49  ;;  %v1053_v52 = vpop.f32.mrb[10].mxu0  ;;  %v1085_v53 = vpop.f32.mrb[10].mxu1 }
 0x12d   :  { %v744_v54 = vadd.f32 %v1305_v42, %v673_v46  ;;  %v776_v55 = vadd.f32 %v1305_v42, %v705_v47  ;;  %v674_v56 = vmul.f32 %v1053_v52, %v1300_v40  ;;  %v706_v57 = vmul.f32 %v1085_v53, %v1300_v40  ;;  %v436_v58 = vpop.f32.mrb[11].mxu0  ;;  %v564_v59 = vpop.f32.mrb[11].mxu1 }
 0x12e   :  { %v742_v60 = vadd.f32 %v1305_v42, %v671_v50  ;;  %v774_v61 = vadd.f32 %v1305_v42, %v703_v51  ;;  %v672_v62 = vmul.f32 %v1300_v40, %v436_v58  ;;  %v704_v63 = vmul.f32 %v1300_v40, %v564_v59 }
 0x12f   :  { %v808_v0 = vmax.f32 %v744_v54, 0.0  ;;  %v840_v1 = vmax.f32 %v776_v55, 0.0  ;;  %v745_v2 = vadd.f32 %v1305_v42, %v674_v56  ;;  %v777_v3 = vadd.f32 %v1305_v42, %v706_v57 }
 0x130   :  { %v806_v4 = vmax.f32 %v742_v60, 0.0  ;;  %v838_v5 = vmax.f32 %v774_v61, 0.0  ;;  %v743_v6 = vadd.f32 %v1305_v42, %v672_v62  ;;  %v775_v7 = vadd.f32 %v1305_v42, %v704_v63 }
 0x131   :  { %872 = vst [vmem:[#allocation7 + $0x50] sm:$0xff] %v808_v0  ;;  %904 = vst [vmem:[#allocation7 + $0x150] sm:$0xff] %v840_v1  ;;  %v809_v8 = vmax.f32 %v745_v2, 0.0  ;;  %v841_v9 = vmax.f32 %v777_v3, 0.0 }
 0x132   :  { %870 = vst [vmem:[#allocation7 + $0x40] sm:$0xff] %v806_v4  ;;  %902 = vst [vmem:[#allocation7 + $0x140] sm:$0xff] %v838_v5  ;;  %v807_v10 = vmax.f32 %v743_v6, 0.0  ;;  %v839_v11 = vmax.f32 %v775_v7, 0.0  ;;  %v1056_v12 = vpop.f32.mrb[12].mxu0  ;;  %v1088_v13 = vpop.f32.mrb[12].mxu1 }
 0x133   :  { %873 = vst [vmem:[#allocation7 + $0x58] sm:$0xff] %v809_v8  ;;  %905 = vst [vmem:[#allocation7 + $0x158] sm:$0xff] %v841_v9  ;;  %v677_v14 = vmul.f32 %v1056_v12, %v1300_v40  ;;  %v709_v15 = vmul.f32 %v1088_v13, %v1300_v40  ;;  %v449_v16 = vpop.f32.mrb[13].mxu0  ;;  %v577_v17 = vpop.f32.mrb[13].mxu1 }
 0x134   :  { %871 = vst [vmem:[#allocation7 + $0x48] sm:$0xff] %v807_v10  ;;  %903 = vst [vmem:[#allocation7 + $0x148] sm:$0xff] %v839_v11  ;;  %v675_v18 = vmul.f32 %v1300_v40, %v449_v16  ;;  %v707_v19 = vmul.f32 %v1300_v40, %v577_v17  ;;  %v1057_v20 = vpop.f32.mrb[14].mxu0  ;;  %v1089_v21 = vpop.f32.mrb[14].mxu1 }
 0x135   :  { %v748_v22 = vadd.f32 %v1305_v42, %v677_v14  ;;  %v780_v23 = vadd.f32 %v1305_v42, %v709_v15  ;;  %v678_v24 = vmul.f32 %v1057_v20, %v1300_v40  ;;  %v710_v25 = vmul.f32 %v1089_v21, %v1300_v40  ;;  %v452_v26 = vpop.f32.mrb[15].mxu0  ;;  %v580_v27 = vpop.f32.mrb[15].mxu1 }
 0x136   :  { %v746_v28 = vadd.f32 %v1305_v42, %v675_v18  ;;  %v778_v29 = vadd.f32 %v1305_v42, %v707_v19  ;;  %v676_v30 = vmul.f32 %v1300_v40, %v452_v26  ;;  %v708_v31 = vmul.f32 %v1300_v40, %v580_v27 }
 0x137   :  { %v812_v32 = vmax.f32 %v748_v22, 0.0  ;;  %v844_v33 = vmax.f32 %v780_v23, 0.0  ;;  %v749_v34 = vadd.f32 %v1305_v42, %v678_v24  ;;  %v781_v35 = vadd.f32 %v1305_v42, %v710_v25 }
 0x138   :  { %v810_v36 = vmax.f32 %v746_v28, 0.0  ;;  %v842_v37 = vmax.f32 %v778_v29, 0.0  ;;  %v747_v38 = vadd.f32 %v1305_v42, %v676_v30  ;;  %v779_v39 = vadd.f32 %v1305_v42, %v708_v31 }
 0x139   :  { %876 = vst [vmem:[#allocation7 + $0x70] sm:$0xff] %v812_v32  ;;  %908 = vst [vmem:[#allocation7 + $0x170] sm:$0xff] %v844_v33  ;;  %v813_v41 = vmax.f32 %v749_v34, 0.0  ;;  %v845_v43 = vmax.f32 %v781_v35, 0.0 }
 0x13a   :  { %874 = vst [vmem:[#allocation7 + $0x60] sm:$0xff] %v810_v36  ;;  %906 = vst [vmem:[#allocation7 + $0x160] sm:$0xff] %v842_v37  ;;  %v811_v44 = vmax.f32 %v747_v38, 0.0  ;;  %v843_v45 = vmax.f32 %v779_v39, 0.0  ;;  %v1060_v46 = vpop.f32.mrb[16].mxu0  ;;  %v1092_v47 = vpop.f32.mrb[16].mxu1 }
 0x13b   :  { %877 = vst [vmem:[#allocation7 + $0x78] sm:$0xff] %v813_v41  ;;  %909 = vst [vmem:[#allocation7 + $0x178] sm:$0xff] %v845_v43  ;;  %v681_v48 = vmul.f32 %v1060_v46, %v1300_v40  ;;  %v713_v49 = vmul.f32 %v1092_v47, %v1300_v40  ;;  %v465_v50 = vpop.f32.mrb[17].mxu0  ;;  %v593_v51 = vpop.f32.mrb[17].mxu1 }
 0x13c   :  { %875 = vst [vmem:[#allocation7 + $0x68] sm:$0xff] %v811_v44  ;;  %907 = vst [vmem:[#allocation7 + $0x168] sm:$0xff] %v843_v45  ;;  %v679_v52 = vmul.f32 %v1300_v40, %v465_v50  ;;  %v711_v53 = vmul.f32 %v1300_v40, %v593_v51  ;;  %v1061_v54 = vpop.f32.mrb[18].mxu0  ;;  %v1093_v55 = vpop.f32.mrb[18].mxu1 }
 0x13d   :  { %v752_v56 = vadd.f32 %v1305_v42, %v681_v48  ;;  %v784_v57 = vadd.f32 %v1305_v42, %v713_v49  ;;  %v682_v58 = vmul.f32 %v1061_v54, %v1300_v40  ;;  %v714_v59 = vmul.f32 %v1093_v55, %v1300_v40  ;;  %v468_v60 = vpop.f32.mrb[19].mxu0  ;;  %v596_v61 = vpop.f32.mrb[19].mxu1 }
 0x13e   :  { %v750_v62 = vadd.f32 %v1305_v42, %v679_v52  ;;  %v782_v63 = vadd.f32 %v1305_v42, %v711_v53  ;;  %v680_v0 = vmul.f32 %v1300_v40, %v468_v60  ;;  %v712_v1 = vmul.f32 %v1300_v40, %v596_v61 }
 0x13f   :  { %v816_v2 = vmax.f32 %v752_v56, 0.0  ;;  %v848_v3 = vmax.f32 %v784_v57, 0.0  ;;  %v753_v4 = vadd.f32 %v1305_v42, %v682_v58  ;;  %v785_v5 = vadd.f32 %v1305_v42, %v714_v59 }
 0x140   :  { %v814_v6 = vmax.f32 %v750_v62, 0.0  ;;  %v846_v7 = vmax.f32 %v782_v63, 0.0  ;;  %v751_v8 = vadd.f32 %v1305_v42, %v680_v0  ;;  %v783_v9 = vadd.f32 %v1305_v42, %v712_v1 }
 0x141   :  { %880 = vst [vmem:[#allocation7 + $0x90] sm:$0xff] %v816_v2  ;;  %912 = vst [vmem:[#allocation7 + $0x190] sm:$0xff] %v848_v3  ;;  %v817_v10 = vmax.f32 %v753_v4, 0.0  ;;  %v849_v11 = vmax.f32 %v785_v5, 0.0 }
 0x142   :  { %878 = vst [vmem:[#allocation7 + $0x80] sm:$0xff] %v814_v6  ;;  %910 = vst [vmem:[#allocation7 + $0x180] sm:$0xff] %v846_v7  ;;  %v815_v12 = vmax.f32 %v751_v8, 0.0  ;;  %v847_v13 = vmax.f32 %v783_v9, 0.0  ;;  %v1064_v14 = vpop.f32.mrb[20].mxu0  ;;  %v1096_v15 = vpop.f32.mrb[20].mxu1 }
 0x143   :  { %881 = vst [vmem:[#allocation7 + $0x98] sm:$0xff] %v817_v10  ;;  %913 = vst [vmem:[#allocation7 + $0x198] sm:$0xff] %v849_v11  ;;  %v685_v16 = vmul.f32 %v1064_v14, %v1300_v40  ;;  %v717_v17 = vmul.f32 %v1096_v15, %v1300_v40  ;;  %v481_v18 = vpop.f32.mrb[21].mxu0  ;;  %v609_v19 = vpop.f32.mrb[21].mxu1 }
 0x144   :  { %879 = vst [vmem:[#allocation7 + $0x88] sm:$0xff] %v815_v12  ;;  %911 = vst [vmem:[#allocation7 + $0x188] sm:$0xff] %v847_v13  ;;  %v683_v20 = vmul.f32 %v1300_v40, %v481_v18  ;;  %v715_v21 = vmul.f32 %v1300_v40, %v609_v19  ;;  %v1065_v22 = vpop.f32.mrb[22].mxu0  ;;  %v1097_v23 = vpop.f32.mrb[22].mxu1 }
 0x145   :  { %v756_v24 = vadd.f32 %v1305_v42, %v685_v16  ;;  %v788_v25 = vadd.f32 %v1305_v42, %v717_v17  ;;  %v686_v26 = vmul.f32 %v1065_v22, %v1300_v40  ;;  %v718_v27 = vmul.f32 %v1097_v23, %v1300_v40  ;;  %v484_v28 = vpop.f32.mrb[23].mxu0  ;;  %v612_v29 = vpop.f32.mrb[23].mxu1 }
 0x146   :  { %v754_v30 = vadd.f32 %v1305_v42, %v683_v20  ;;  %v786_v31 = vadd.f32 %v1305_v42, %v715_v21  ;;  %v684_v32 = vmul.f32 %v1300_v40, %v484_v28  ;;  %v716_v33 = vmul.f32 %v1300_v40, %v612_v29 }
 0x147   :  { %v820_v34 = vmax.f32 %v756_v24, 0.0  ;;  %v852_v35 = vmax.f32 %v788_v25, 0.0  ;;  %v757_v36 = vadd.f32 %v1305_v42, %v686_v26  ;;  %v789_v37 = vadd.f32 %v1305_v42, %v718_v27 }
 0x148   :  { %v818_v38 = vmax.f32 %v754_v30, 0.0  ;;  %v850_v39 = vmax.f32 %v786_v31, 0.0  ;;  %v755_v41 = vadd.f32 %v1305_v42, %v684_v32  ;;  %v787_v43 = vadd.f32 %v1305_v42, %v716_v33 }
 0x149   :  { %884 = vst [vmem:[#allocation7 + $0xb0] sm:$0xff] %v820_v34  ;;  %916 = vst [vmem:[#allocation7 + $0x1b0] sm:$0xff] %v852_v35  ;;  %v821_v44 = vmax.f32 %v757_v36, 0.0  ;;  %v853_v45 = vmax.f32 %v789_v37, 0.0 }
 0x14a   :  { %882 = vst [vmem:[#allocation7 + $0xa0] sm:$0xff] %v818_v38  ;;  %914 = vst [vmem:[#allocation7 + $0x1a0] sm:$0xff] %v850_v39  ;;  %v819_v46 = vmax.f32 %v755_v41, 0.0  ;;  %v851_v47 = vmax.f32 %v787_v43, 0.0  ;;  %v1068_v48 = vpop.f32.mrb[24].mxu0  ;;  %v1100_v49 = vpop.f32.mrb[24].mxu1 }
 0x14b   :  { %885 = vst [vmem:[#allocation7 + $0xb8] sm:$0xff] %v821_v44  ;;  %917 = vst [vmem:[#allocation7 + $0x1b8] sm:$0xff] %v853_v45  ;;  %v689_v50 = vmul.f32 %v1068_v48, %v1300_v40  ;;  %v721_v51 = vmul.f32 %v1100_v49, %v1300_v40  ;;  %v497_v52 = vpop.f32.mrb[25].mxu0  ;;  %v625_v53 = vpop.f32.mrb[25].mxu1 }
 0x14c   :  { %883 = vst [vmem:[#allocation7 + $0xa8] sm:$0xff] %v819_v46  ;;  %915 = vst [vmem:[#allocation7 + $0x1a8] sm:$0xff] %v851_v47  ;;  %v687_v54 = vmul.f32 %v1300_v40, %v497_v52  ;;  %v719_v55 = vmul.f32 %v1300_v40, %v625_v53  ;;  %v1069_v56 = vpop.f32.mrb[26].mxu0  ;;  %v1101_v57 = vpop.f32.mrb[26].mxu1 }
 0x14d   :  { %v760_v58 = vadd.f32 %v1305_v42, %v689_v50  ;;  %v792_v59 = vadd.f32 %v1305_v42, %v721_v51  ;;  %v690_v60 = vmul.f32 %v1069_v56, %v1300_v40  ;;  %v722_v61 = vmul.f32 %v1101_v57, %v1300_v40  ;;  %v500_v62 = vpop.f32.mrb[27].mxu0  ;;  %v628_v63 = vpop.f32.mrb[27].mxu1 }
 0x14e   :  { %v758_v0 = vadd.f32 %v1305_v42, %v687_v54  ;;  %v790_v1 = vadd.f32 %v1305_v42, %v719_v55  ;;  %v688_v2 = vmul.f32 %v1300_v40, %v500_v62  ;;  %v720_v3 = vmul.f32 %v1300_v40, %v628_v63 }
 0x14f   :  { %v824_v4 = vmax.f32 %v760_v58, 0.0  ;;  %v856_v5 = vmax.f32 %v792_v59, 0.0  ;;  %v761_v6 = vadd.f32 %v1305_v42, %v690_v60  ;;  %v793_v7 = vadd.f32 %v1305_v42, %v722_v61 }
 0x150   :  { %v822_v8 = vmax.f32 %v758_v0, 0.0  ;;  %v854_v9 = vmax.f32 %v790_v1, 0.0  ;;  %v759_v10 = vadd.f32 %v1305_v42, %v688_v2  ;;  %v791_v11 = vadd.f32 %v1305_v42, %v720_v3 }
 0x151   :  { %888 = vst [vmem:[#allocation7 + $0xd0] sm:$0xff] %v824_v4  ;;  %920 = vst [vmem:[#allocation7 + $0x1d0] sm:$0xff] %v856_v5  ;;  %v825_v12 = vmax.f32 %v761_v6, 0.0  ;;  %v857_v13 = vmax.f32 %v793_v7, 0.0 }
 0x152   :  { %886 = vst [vmem:[#allocation7 + $0xc0] sm:$0xff] %v822_v8  ;;  %918 = vst [vmem:[#allocation7 + $0x1c0] sm:$0xff] %v854_v9  ;;  %v823_v14 = vmax.f32 %v759_v10, 0.0  ;;  %v855_v15 = vmax.f32 %v791_v11, 0.0  ;;  %v1072_v16 = vpop.f32.mrb[28].mxu0  ;;  %v1104_v17 = vpop.f32.mrb[28].mxu1 }
 0x153   :  { %889 = vst [vmem:[#allocation7 + $0xd8] sm:$0xff] %v825_v12  ;;  %921 = vst [vmem:[#allocation7 + $0x1d8] sm:$0xff] %v857_v13  ;;  %v693_v18 = vmul.f32 %v1072_v16, %v1300_v40  ;;  %v725_v19 = vmul.f32 %v1104_v17, %v1300_v40  ;;  %v513_v20 = vpop.f32.mrb[29].mxu0  ;;  %v641_v21 = vpop.f32.mrb[29].mxu1 }
 0x154   :  { %887 = vst [vmem:[#allocation7 + $0xc8] sm:$0xff] %v823_v14  ;;  %919 = vst [vmem:[#allocation7 + $0x1c8] sm:$0xff] %v855_v15  ;;  %v691_v22 = vmul.f32 %v1300_v40, %v513_v20  ;;  %v723_v23 = vmul.f32 %v1300_v40, %v641_v21  ;;  %v1073_v24 = vpop.f32.mrb[30].mxu0  ;;  %v1105_v25 = vpop.f32.mrb[30].mxu1 }
 0x155   :  { %v764_v26 = vadd.f32 %v1305_v42, %v693_v18  ;;  %v796_v27 = vadd.f32 %v1305_v42, %v725_v19  ;;  %v694_v28 = vmul.f32 %v1073_v24, %v1300_v40  ;;  %v726_v29 = vmul.f32 %v1105_v25, %v1300_v40  ;;  %v516_v30 = vpop.f32.mrb[31].mxu0  ;;  %v644_v31 = vpop.f32.mrb[31].mxu1 }
 0x156   :  { %v762_v32 = vadd.f32 %v1305_v42, %v691_v22  ;;  %v794_v33 = vadd.f32 %v1305_v42, %v723_v23  ;;  %v692_v34 = vmul.f32 %v1300_v40, %v516_v30  ;;  %v724_v35 = vmul.f32 %v1300_v40, %v644_v31 }
 0x157   :  { %v828_v36 = vmax.f32 %v764_v26, 0.0  ;;  %v860_v37 = vmax.f32 %v796_v27, 0.0  ;;  %v765_v38 = vadd.f32 %v1305_v42, %v694_v28  ;;  %v797_v39 = vadd.f32 %v1305_v42, %v726_v29 }
 0x158   :  { %v826_v41 = vmax.f32 %v762_v32, 0.0  ;;  %v858_v43 = vmax.f32 %v794_v33, 0.0  ;;  %v763_v44 = vadd.f32 %v1305_v42, %v692_v34  ;;  %v795_v45 = vadd.f32 %v1305_v42, %v724_v35 }
 0x159   :  { %892 = vst [vmem:[#allocation7 + $0xf0] sm:$0xff] %v828_v36  ;;  %924 = vst [vmem:[#allocation7 + $0x1f0] sm:$0xff] %v860_v37  ;;  %v829_v46 = vmax.f32 %v765_v38, 0.0  ;;  %v861_v47 = vmax.f32 %v797_v39, 0.0 }
 0x15a   :  { %890 = vst [vmem:[#allocation7 + $0xe0] sm:$0xff] %v826_v41  ;;  %922 = vst [vmem:[#allocation7 + $0x1e0] sm:$0xff] %v858_v43  ;;  %v827_v40 = vmax.f32 %v763_v44, 0.0  ;;  %v859_v48 = vmax.f32 %v795_v45, 0.0 }
 0x15b   :  { %893 = vst [vmem:[#allocation7 + $0xf8] sm:$0xff] %v829_v46  ;;  %925 = vst [vmem:[#allocation7 + $0x1f8] sm:$0xff] %v861_v47 }
 0x15c   :  { %891 = vst [vmem:[#allocation7 + $0xe8] sm:$0xff] %v827_v40  ;;  %923 = vst [vmem:[#allocation7 + $0x1e8] sm:$0xff] %v859_v48 }
 0x15d   :  { %1224 = shalt.err (!%p1221_p6)
}
 0x15e   :  { %s1225_s20 = scalar_lea.hbm %s1451_s4, 8192 }
 0x15f   :  { %p1226_p7 = scmp.ne.s32.totalorder %s1451_s4, %s1225_s20  ;;  %p1229_p8 = scmp.lt.u32.totalorder %s1225_s20, %s1451_s4 }
 0x161   :  { %p1231_p9 = pnand %p1229_p8, %p1226_p7 }
 0x163   :  { %1234 = shalt.err (!%p1231_p9)
}
 0x164   :  { %s1246_s25 = smov 128   ;;  %s1247_s26 = smov 8  }
 0x165   :  { %937 = dma.vmem_to_hbm [thread:$0]  %s932_s3, 8192, %s1451_s4, [#allocation4], %s1246_s25, %s1246_s25, %s1247_s26  }
 0x166   :  { %1239 = dma.done.wait [#allocation4], 8192  }
 0x167   :  { %1240 = vsyncadd [#allocation4], 4294959104 }
 0x168   :  { %941 = vsyncpa [#allocation3], 1 }
 0x169   :  { %942 = vsyncpa [#allocation6], 1 }
 0x16a   :  { %943 = vsyncpa [#allocation4], 1 }

</bundles_post_ra>
